<compile_context>
chip_gen: v6e
topology: v6e:2x2x1
jax: 0.10.0
libtpu: 0.0.40
codegen_flags: <defaults>
</compile_context>

<pallas_src>
import jax
import jax.numpy as jnp
from jax.experimental import pallas as pl
from jax.experimental.pallas import tpu as pltpu

LN_EPS = 1e-5          # torch.nn.LayerNorm default eps
N_PARAMS = 36          # 4 (pnet) + 16 (u0net) + 16 (hnet)


def _round_up(x, m):
    return ((x + m - 1) // m) * m


# ---------------------------------------------------------------------------
# pure-JAX reference (PyTorch-faithful math, unpacked params) — used only for
# the correctness checks in __main__.
# ---------------------------------------------------------------------------
def _linear(x, w, b):
    return jnp.dot(x, w, preferred_element_type=jnp.float32) + b


def _layernorm_ref(x, gamma, beta):
    mu = jnp.mean(x, axis=-1, keepdims=True)
    xc = x - mu
    var = jnp.mean(xc * xc, axis=-1, keepdims=True)      # biased var (torch LN)
    return xc * jax.lax.rsqrt(var + LN_EPS) * gamma + beta


def _lblock_ref(x, p6):
    wa, ba, wb, bb, g, be = p6
    t = _linear(jnp.maximum(_linear(x, wa, ba), 0.0), wb, bb)
    return _layernorm_ref(t, g, be) + x


def _pmlp_ref(u0, p, P):
    hp = _linear(p, P[0], P[1])
    hp = _linear(hp, P[2], P[3])
    hu = _linear(u0, P[4], P[5])
    hu = _lblock_ref(hu, P[6:12])
    hu = _lblock_ref(hu, P[12:18])
    hu = _linear(hu, P[18], P[19])
    m = (hp + hu) * 0.5                                   # stack(...,-1).mean(-1)
    h = _linear(m, P[20], P[21])
    h = _lblock_ref(h, P[22:28])
    h = _lblock_ref(h, P[28:34])
    return _linear(h, P[34], P[35])


# ---------------------------------------------------------------------------
# Pallas kernels (factories close over the hidden size & matmul input dtype)
# ---------------------------------------------------------------------------
def _make_kernel_rows(H, mm_dtype):
    """Batch along sublanes: activations are (batch_tile, H)."""
    inv_h = 1.0 / H

    def kernel(u0_ref, p_ref, w_in_ref, w_hh_ref, rows_ref, w_out_ref,
               b_out_ref, out_ref):
        def row(i):                                   # (1, H) parameter row
            return rows_ref[pl.ds(i, 1), :]

        def lin_hh(x, wi, bi):                        # x @ W_hh[wi] + rows[bi]
            return jnp.dot(x.astype(mm_dtype), w_hh_ref[wi],
                           preferred_element_type=jnp.float32) + row(bi)

        def layernorm(x, gi, bi):
            # one-pass variance: the two reductions are independent -> overlap
            s1 = jnp.sum(x, axis=-1, keepdims=True)
            s2 = jnp.sum(x * x, axis=-1, keepdims=True)
            mu = s1 * inv_h
            var = s2 * inv_h - mu * mu
            xhat = (x - mu) * jax.lax.rsqrt(var + LN_EPS)
            return xhat * row(gi) + row(bi)

        def lblock(x, wa, ba, wb, bb, g, be):
            t = lin_hh(jnp.maximum(lin_hh(x, wa, ba), 0.0), wb, bb)
            return layernorm(t, g, be) + x

        # --- u0net front ---
        hu = jnp.dot(u0_ref[...].astype(mm_dtype), w_in_ref[...],
                     preferred_element_type=jnp.float32) + row(0)
        hu = lblock(hu, 0, 1, 1, 2, 3, 4)
        hu = lblock(hu, 2, 5, 3, 6, 7, 8)

        # --- folded seam: u0net last Linear + pnet + 0.5*mean + hnet first Linear
        h = (jnp.dot(hu.astype(mm_dtype), w_hh_ref[4],
                     preferred_element_type=jnp.float32)
             + p_ref[...] * row(9) + row(10))

        # --- hnet tail ---
        h = lblock(h, 5, 11, 6, 12, 13, 14)
        h = lblock(h, 7, 15, 8, 16, 17, 18)
        out = jnp.dot(h.astype(mm_dtype), w_out_ref[...],
                      preferred_element_type=jnp.float32) + b_out_ref[...]
        out_ref[...] = out.astype(out_ref.dtype)

    return kernel


def _make_kernel_lanes(H, mm_dtype):
    """Batch along lanes: activations are (H, batch_tile) (lane-dense)."""
    inv_h = 1.0 / H

    def kernel(u0t_ref, pt_ref, w_int_ref, w_hht_ref, cols_ref, w_outt_ref,
               b_outt_ref, out_ref):
        def col(i):                                   # (H, 1) parameter column
            return cols_ref[:, pl.ds(i, 1)]

        def lin_hh(x, wi, bi):                        # W_hh[wi]^T @ x + cols[bi]
            return jnp.dot(w_hht_ref[wi], x.astype(mm_dtype),
                           preferred_element_type=jnp.float32) + col(bi)

        def layernorm(x, gi, bi):
            s1 = jnp.sum(x, axis=0, keepdims=True)
            s2 = jnp.sum(x * x, axis=0, keepdims=True)
            mu = s1 * inv_h
            var = s2 * inv_h - mu * mu
            xhat = (x - mu) * jax.lax.rsqrt(var + LN_EPS)
            return xhat * col(gi) + col(bi)

        def lblock(x, wa, ba, wb, bb, g, be):
            t = lin_hh(jnp.maximum(lin_hh(x, wa, ba), 0.0), wb, bb)
            return layernorm(t, g, be) + x

        hu = jnp.dot(w_int_ref[...], u0t_ref[...].astype(mm_dtype),
                     preferred_element_type=jnp.float32) + col(0)
        hu = lblock(hu, 0, 1, 1, 2, 3, 4)
        hu = lblock(hu, 2, 5, 3, 6, 7, 8)

        h = (jnp.dot(w_hht_ref[4], hu.astype(mm_dtype),
                     preferred_element_type=jnp.float32)
             + pt_ref[...] * col(9) + col(10))

        h = lblock(h, 5, 11, 6, 12, 13, 14)
        h = lblock(h, 7, 15, 8, 16, 17, 18)
        out = jnp.dot(w_outt_ref[...], h.astype(mm_dtype),
                      preferred_element_type=jnp.float32) + b_outt_ref[...]
        out_ref[...] = out.astype(out_ref.dtype)

    return kernel


# ---------------------------------------------------------------------------
# host-side slab packing + algebraic folding
# ---------------------------------------------------------------------------
def _pack_params(P, K_PAD, N_PAD, mm_dtype):
    H = P[2].shape[0]
    IN = P[4].shape[0]
    OUT = P[34].shape[1]

    # pnet(p) = (p@Wp + bp)@W0 + b0 = p*v + c   (no nonlinearity)
    v = P[0] @ P[2]                                    # (1, H)
    c = P[1] @ P[2] + P[3]                             # (1, H)
    # h0 = 0.5*(pnet(p) + z@Wu_last + bu_last) @ Wh_first + bh_first
    w_fold = 0.5 * (P[18] @ P[20])                     # (H, H)
    v_fold = 0.5 * (v @ P[20])                         # (1, H)
    c_fold = 0.5 * ((c + P[19]) @ P[20]) + P[21]       # (1, H)

    w_in = jnp.pad(P[4], ((0, K_PAD - IN), (0, 0))).astype(mm_dtype)   # (K_PAD, H)
    w_hh = jnp.stack([P[6], P[8], P[12], P[14], w_fold,
                      P[22], P[24], P[28], P[30]]).astype(mm_dtype)    # (9, H, H)
    rows = jnp.concatenate([P[5],
                            P[7], P[9], P[10], P[11],
                            P[13], P[15], P[16], P[17],
                            v_fold, c_fold,
                            P[23], P[25], P[26], P[27],
                            P[29], P[31], P[32], P[33]], axis=0)       # (19, H) f32
    w_out = jnp.pad(P[34], ((0, 0), (0, N_PAD - OUT))).astype(mm_dtype)  # (H, N_PAD)
    b_out = jnp.pad(P[35], ((0, 0), (0, N_PAD - OUT)))                   # (1, N_PAD)
    return w_in, w_hh, rows, w_out, b_out


# ---------------------------------------------------------------------------
# wrapper
# ---------------------------------------------------------------------------
def pmlp_forward(u0, p, flat_params, *, batch_tile=None, layout="auto",
                 use_bf16=False):
    """u0: (B, IN) f32, p: (B, 1) f32, flat_params: 36 arrays (see init)."""
    B, IN_u0 = u0.shape
    assert p.shape == (B, 1)
    assert len(flat_params) == N_PARAMS
    H = flat_params[2].shape[0]
    IN = flat_params[4].shape[0]          # u0net input size
    OUT = flat_params[34].shape[1]        # hnet output size (not assumed == IN)
    assert IN_u0 == IN

    mm_dtype = jnp.bfloat16 if use_bf16 else jnp.float32

    # --- batch tile policy ---
    # Per-grid-step overhead ~0.35us, so a single step is best for small B.
    # For large B a 1024-row tile lets BlockSpec double-buffering hide the
    # u0 / output DMAs, and the "parallel" grid axis shards across v7x's two
    # TensorCores (only worthwhile when each per-core tile is large; never
    # split a tiny batch just to use both cores).
    if batch_tile is None:
        batch_tile = B if B <= 1024 else 1024
    if batch_tile != B:
        assert batch_tile % 8 == 0
    B_pad = _round_up(B, batch_tile)

    K_PAD = _round_up(IN, 128)            # contraction dim of the first matmul
    N_PAD = _round_up(OUT, 128)           # lane-dense output dim (rows layout)

    w_in, w_hh, rows, w_out, b_out = _pack_params(flat_params, K_PAD, N_PAD,
                                                  mm_dtype)
    n_hh, n_rows = w_hh.shape[0], rows.shape[0]

    if layout == "auto":
        # Batch-in-lanes pays once the batch tile fills the 128-lane vregs:
        # all VPU/LN math becomes lane-dense and each MXU pass produces a full
        # slab of useful columns instead of H=24 of 128.
        layout = "lanes" if (batch_tile % 128 == 0) else "rows"

    u0_p = jnp.pad(u0, ((0, B_pad - B), (0, K_PAD - IN)))
    p_p = jnp.pad(p, ((0, B_pad - B), (0, 0)))
    grid = (B_pad // batch_tile,)

    def rep2(shape):
        return pl.BlockSpec(shape, lambda i: (0, 0))

    def rep3(shape):
        return pl.BlockSpec(shape, lambda i: (0, 0, 0))

    # advisory cost estimate (post-folding: 1 + 9 + 1 = 11 matmuls)
    itemsize = 2 if use_bf16 else 4
    flops = 2 * B_pad * (K_PAD * H + n_hh * H * H + H * N_PAD) + 30 * B_pad * H
    transcendentals = 4 * B_pad           # one rsqrt per LN row, 4 LNs
    bytes_accessed = (4 * B_pad * (K_PAD + 1 + N_PAD)
                      + itemsize * (w_in.size + w_hh.size + w_out.size)
                      + 4 * (rows.size + b_out.size))
    cost = pl.CostEstimate(flops=flops, transcendentals=transcendentals,
                           bytes_accessed=bytes_accessed)

    # Scoped-VMEM: tiny at these sizes; raise the limit explicitly only when a
    # large batch tile needs it (v5e default scoped limit 16 MiB, v6e/v7x
    # 32 MiB; v7x physical VMEM is only 64 MiB so stay well under it).
    est_vmem = (4 * (2 * batch_tile * (K_PAD + N_PAD) + 10 * batch_tile * H)
                + 2 * (itemsize * (w_in.size + w_hh.size + w_out.size)
                       + 4 * (rows.size + b_out.size)))
    vmem_limit = None
    if est_vmem > 12 * 1024 * 1024:
        vmem_limit = int(min(2 * est_vmem, 60 * 1024 * 1024))

    cparams = pltpu.CompilerParams(dimension_semantics=("parallel",),
                                   vmem_limit_bytes=vmem_limit)

    if layout == "rows":
        out_pad = pl.pallas_call(
            _make_kernel_rows(H, mm_dtype),
            out_shape=jax.ShapeDtypeStruct((B_pad, N_PAD), u0.dtype),
            grid=grid,
            in_specs=[
                pl.BlockSpec((batch_tile, K_PAD), lambda i: (i, 0)),   # u0
                pl.BlockSpec((batch_tile, 1), lambda i: (i, 0)),       # p
                rep2((K_PAD, H)),                                      # w_in
                rep3((n_hh, H, H)),                                    # w_hh slab
                rep2((n_rows, H)),                                     # rows slab
                rep2((H, N_PAD)),                                      # w_out
                rep2((1, N_PAD)),                                      # b_out
            ],
            out_specs=pl.BlockSpec((batch_tile, N_PAD), lambda i: (i, 0)),
            compiler_params=cparams,
            cost_estimate=cost,
        )(u0_p, p_p, w_in, w_hh, rows, w_out, b_out)
        return out_pad[:B, :OUT]

    # layout == "lanes": batch is the lane dimension (throughput layout).
    u0_t = u0_p.T                          # (K_PAD, B_pad)
    p_t = p_p.T                            # (1, B_pad)
    w_in_t = jnp.transpose(w_in)           # (H, K_PAD)
    w_hh_t = jnp.transpose(w_hh, (0, 2, 1))
    cols = jnp.transpose(rows)             # (H, n_rows)
    w_out_t = jnp.transpose(w_out)         # (N_PAD, H)
    b_out_t = jnp.transpose(b_out)         # (N_PAD, 1)

    out_t = pl.pallas_call(
        _make_kernel_lanes(H, mm_dtype),
        out_shape=jax.ShapeDtypeStruct((N_PAD, B_pad), u0.dtype),
        grid=grid,
        in_specs=[
            pl.BlockSpec((K_PAD, batch_tile), lambda i: (0, i)),       # u0^T
            pl.BlockSpec((1, batch_tile), lambda i: (0, i)),           # p^T
            rep2((H, K_PAD)),                                          # w_in^T
            rep3((n_hh, H, H)),                                        # w_hh^T slab
            rep2((H, n_rows)),                                         # cols slab
            rep2((N_PAD, H)),                                          # w_out^T
            rep2((N_PAD, 1)),                                          # b_out^T
        ],
        out_specs=pl.BlockSpec((N_PAD, batch_tile), lambda i: (0, i)),
        compiler_params=cparams,
        cost_estimate=cost,
    )(u0_t, p_t, w_in_t, w_hh_t, cols, w_out_t, b_out_t)
    return out_t[:OUT, :B].T


# ---------------------------------------------------------------------------
# deterministic parameter init (PyTorch-style uniform for Linear, ones/zeros
# for LayerNorm affine) — synthetic, not a checkpoint load.
# Weights stored as (in, out); biases/affine as (1, feat) rows.
# ---------------------------------------------------------------------------
def init_linear(key, fan_in, fan_out):
    kw, kb = jax.random.split(key)
    bound = 1.0 / (fan_in ** 0.5)
    w = jax.random.uniform(kw, (fan_in, fan_out), jnp.float32, -bound, bound)
    b = jax.random.uniform(kb, (1, fan_out), jnp.float32, -bound, bound)
    return [w, b]


def init_lblock(key, h):
    k1, k2 = jax.random.split(key)
    return (init_linear(k1, h, h)
            + init_linear(k2, h, h)
            + [jnp.ones((1, h), jnp.float32), jnp.zeros((1, h), jnp.float32)])


def init_gen_net(key, layers, insize, outsize, hsize):
    keys = jax.random.split(key, layers + 2)
    params = init_linear(keys[0], insize, hsize)
    for i in range(layers):
        params += init_lblock(keys[1 + i], hsize)
    params += init_linear(keys[-1], hsize, outsize)
    return params


# ---------------------------------------------------------------------------
if __name__ == "__main__":
    B, IN, H, L = 8, 101, 24, 2   # pmlp defaults: input_size=101, hidden=24, layers=2

    key = jax.random.PRNGKey(0)
    k_u0, k_p, k_u0b, k_pb, k_pnet, k_u0net, k_hnet = jax.random.split(key, 7)

    flat_params = (init_gen_net(k_pnet, 0, 1, H, H)
                   + init_gen_net(k_u0net, L, IN, H, H)
                   + init_gen_net(k_hnet, L, H, IN, H))
    # TODO(synk): convertnet from pmlp.__init__ is unused in forward, so it is
    # intentionally not built here.

    # --- small batch: single grid step, batch-in-sublanes layout, f32 ---
    u0 = jax.random.normal(k_u0, (B, IN), jnp.float32)
    p = jax.random.normal(k_p, (B, 1), jnp.float32)
    out = jax.block_until_ready(pmlp_forward(u0, p, flat_params))
    ref = _pmlp_ref(u0, p, flat_params)
    assert out.shape == (B, IN)
    assert bool(jnp.all(jnp.isfinite(out)))
    assert bool(jnp.allclose(out, ref, atol=1e-3, rtol=1e-3))

    # --- bigger batch: 2-step grid, batch-in-lanes (lane-dense) layout, f32 ---
    B2 = 256
    u0b = jax.random.normal(k_u0b, (B2, IN), jnp.float32)
    pb = jax.random.normal(k_pb, (B2, 1), jnp.float32)
    out2 = jax.block_until_ready(
        pmlp_forward(u0b, pb, flat_params, batch_tile=128))
    ref2 = _pmlp_ref(u0b, pb, flat_params)
    assert out2.shape == (B2, IN)
    assert bool(jnp.all(jnp.isfinite(out2)))
    assert bool(jnp.allclose(out2, ref2, atol=2e-3, rtol=2e-3))

    # --- bf16 MXU-input path (f32 accumulate / f32 LN), looser tolerance ---
    out3 = jax.block_until_ready(
        pmlp_forward(u0b, pb, flat_params, use_bf16=True))
    assert out3.shape == (B2, IN)
    assert bool(jnp.all(jnp.isfinite(out3)))
    assert bool(jnp.allclose(out3, ref2, atol=1e-1, rtol=1e-1))

    print("KERNEL_OK")
</pallas_src>

<mosaic_0001>
module attributes {stable_mosaic.version = 11 : i64} {
  func.func @kernel(%arg0: i32, %arg1: memref<8x128xf32, #tpu.memory_space<vmem>>, %arg2: memref<8x1xf32, #tpu.memory_space<vmem>>, %arg3: memref<128x24xf32, #tpu.memory_space<vmem>>, %arg4: memref<9x24x24xf32, #tpu.memory_space<vmem>>, %arg5: memref<19x24xf32, #tpu.memory_space<vmem>>, %arg6: memref<24x128xf32, #tpu.memory_space<vmem>>, %arg7: memref<1x128xf32, #tpu.memory_space<vmem>>, %arg8: memref<8x128xf32, #tpu.memory_space<vmem>>) attributes {dimension_semantics = [#tpu.dimension_semantics<parallel>], iteration_bounds = array<i64: 1>, scalar_prefetch = 0 : i64, scratch_operands = 0 : i64, tpu.core_type = #tpu.core_type<tc>, window_params = [{transform_indices = @transform_0, window_bounds = array<i64: 8, 128>}, {transform_indices = @transform_1, window_bounds = array<i64: 8, 1>}, {pipeline_mode = #tpu.pipeline_mode<synchronous>, transform_indices = @transform_2, window_bounds = array<i64: 128, 24>}, {pipeline_mode = #tpu.pipeline_mode<synchronous>, transform_indices = @transform_3, window_bounds = array<i64: 9, 24, 24>}, {pipeline_mode = #tpu.pipeline_mode<synchronous>, transform_indices = @transform_4, window_bounds = array<i64: 19, 24>}, {pipeline_mode = #tpu.pipeline_mode<synchronous>, transform_indices = @transform_5, window_bounds = array<i64: 24, 128>}, {pipeline_mode = #tpu.pipeline_mode<synchronous>, transform_indices = @transform_6, window_bounds = array<i64: 1, 128>}, {transform_indices = @transform_7, window_bounds = array<i64: 8, 128>}]} {
    %c0 = arith.constant 0 : index
    %c0_0 = arith.constant 0 : index
    %0 = vector.load %arg1[%c0, %c0_0] : memref<8x128xf32, #tpu.memory_space<vmem>>, vector<8x128xf32>
    %c0_1 = arith.constant 0 : index
    %c0_2 = arith.constant 0 : index
    %1 = vector.load %arg3[%c0_1, %c0_2] : memref<128x24xf32, #tpu.memory_space<vmem>>, vector<128x24xf32>
    %cst = arith.constant dense<0.000000e+00> : vector<8x24xf32>
    %2 = tpu.matmul %0, %1, %cst {dimension_numbers = #tpu.dot_dimension_numbers<[1], [0], [0], [1], [0, 0, 1, 1], [], []>} : vector<8x128xf32>, vector<128x24xf32>, vector<8x24xf32> -> vector<8x24xf32>
    %c0_3 = arith.constant 0 : index
    %c0_4 = arith.constant 0 : index
    %3 = vector.load %arg5[%c0_3, %c0_4] : memref<19x24xf32, #tpu.memory_space<vmem>>, vector<1x24xf32>
    %4 = vector.broadcast %3 : vector<1x24xf32> to vector<8x24xf32>
    %5 = arith.addf %2, %4 : vector<8x24xf32>
    %c0_5 = arith.constant 0 : index
    %c0_6 = arith.constant 0 : index
    %c0_7 = arith.constant 0 : index
    %6 = vector.load %arg4[%c0_5, %c0_6, %c0_7] : memref<9x24x24xf32, #tpu.memory_space<vmem>>, vector<1x24x24xf32>
    %7 = vector.shape_cast %6 : vector<1x24x24xf32> to vector<24x24xf32>
    %cst_8 = arith.constant dense<0.000000e+00> : vector<8x24xf32>
    %8 = tpu.matmul %5, %7, %cst_8 {dimension_numbers = #tpu.dot_dimension_numbers<[1], [0], [0], [1], [0, 0, 1, 1], [], []>} : vector<8x24xf32>, vector<24x24xf32>, vector<8x24xf32> -> vector<8x24xf32>
    %c1 = arith.constant 1 : index
    %c0_9 = arith.constant 0 : index
    %9 = vector.load %arg5[%c1, %c0_9] : memref<19x24xf32, #tpu.memory_space<vmem>>, vector<1x24xf32>
    %10 = vector.broadcast %9 : vector<1x24xf32> to vector<8x24xf32>
    %11 = arith.addf %8, %10 : vector<8x24xf32>
    %cst_10 = arith.constant 0.000000e+00 : f32
    %12 = vector.broadcast %cst_10 : f32 to vector<8x24xf32>
    %13 = arith.maximumf %11, %12 : vector<8x24xf32>
    %c1_11 = arith.constant 1 : index
    %c0_12 = arith.constant 0 : index
    %c0_13 = arith.constant 0 : index
    %14 = vector.load %arg4[%c1_11, %c0_12, %c0_13] : memref<9x24x24xf32, #tpu.memory_space<vmem>>, vector<1x24x24xf32>
    %15 = vector.shape_cast %14 : vector<1x24x24xf32> to vector<24x24xf32>
    %cst_14 = arith.constant dense<0.000000e+00> : vector<8x24xf32>
    %16 = tpu.matmul %13, %15, %cst_14 {dimension_numbers = #tpu.dot_dimension_numbers<[1], [0], [0], [1], [0, 0, 1, 1], [], []>} : vector<8x24xf32>, vector<24x24xf32>, vector<8x24xf32> -> vector<8x24xf32>
    %c2 = arith.constant 2 : index
    %c0_15 = arith.constant 0 : index
    %17 = vector.load %arg5[%c2, %c0_15] : memref<19x24xf32, #tpu.memory_space<vmem>>, vector<1x24xf32>
    %18 = vector.broadcast %17 : vector<1x24xf32> to vector<8x24xf32>
    %19 = arith.addf %16, %18 : vector<8x24xf32>
    %cst_16 = arith.constant dense<0.000000e+00> : vector<8xf32>
    %20 = vector.multi_reduction <add>, %19, %cst_16 [1] : vector<8x24xf32> to vector<8xf32>
    %21 = vector.shape_cast %20 : vector<8xf32> to vector<8x1xf32>
    %22 = arith.mulf %19, %19 : vector<8x24xf32>
    %cst_17 = arith.constant dense<0.000000e+00> : vector<8xf32>
    %23 = vector.multi_reduction <add>, %22, %cst_17 [1] : vector<8x24xf32> to vector<8xf32>
    %24 = vector.shape_cast %23 : vector<8xf32> to vector<8x1xf32>
    %cst_18 = arith.constant 0.0416666679 : f32
    %25 = vector.broadcast %cst_18 : f32 to vector<8x1xf32>
    %26 = arith.mulf %21, %25 : vector<8x1xf32>
    %cst_19 = arith.constant 0.0416666679 : f32
    %27 = vector.broadcast %cst_19 : f32 to vector<8x1xf32>
    %28 = arith.mulf %24, %27 : vector<8x1xf32>
    %29 = arith.mulf %26, %26 : vector<8x1xf32>
    %30 = arith.subf %28, %29 : vector<8x1xf32>
    %31 = vector.broadcast %26 : vector<8x1xf32> to vector<8x24xf32>
    %32 = arith.subf %19, %31 : vector<8x24xf32>
    %cst_20 = arith.constant 9.99999974E-6 : f32
    %33 = vector.broadcast %cst_20 : f32 to vector<8x1xf32>
    %34 = arith.addf %30, %33 : vector<8x1xf32>
    %35 = math.rsqrt %34 : vector<8x1xf32>
    %36 = vector.broadcast %35 : vector<8x1xf32> to vector<8x24xf32>
    %37 = arith.mulf %32, %36 : vector<8x24xf32>
    %c3 = arith.constant 3 : index
    %c0_21 = arith.constant 0 : index
    %38 = vector.load %arg5[%c3, %c0_21] : memref<19x24xf32, #tpu.memory_space<vmem>>, vector<1x24xf32>
    %39 = vector.broadcast %38 : vector<1x24xf32> to vector<8x24xf32>
    %40 = arith.mulf %37, %39 : vector<8x24xf32>
    %c4 = arith.constant 4 : index
    %c0_22 = arith.constant 0 : index
    %41 = vector.load %arg5[%c4, %c0_22] : memref<19x24xf32, #tpu.memory_space<vmem>>, vector<1x24xf32>
    %42 = vector.broadcast %41 : vector<1x24xf32> to vector<8x24xf32>
    %43 = arith.addf %40, %42 : vector<8x24xf32>
    %44 = arith.addf %43, %5 : vector<8x24xf32>
    %c2_23 = arith.constant 2 : index
    %c0_24 = arith.constant 0 : index
    %c0_25 = arith.constant 0 : index
    %45 = vector.load %arg4[%c2_23, %c0_24, %c0_25] : memref<9x24x24xf32, #tpu.memory_space<vmem>>, vector<1x24x24xf32>
    %46 = vector.shape_cast %45 : vector<1x24x24xf32> to vector<24x24xf32>
    %cst_26 = arith.constant dense<0.000000e+00> : vector<8x24xf32>
    %47 = tpu.matmul %44, %46, %cst_26 {dimension_numbers = #tpu.dot_dimension_numbers<[1], [0], [0], [1], [0, 0, 1, 1], [], []>} : vector<8x24xf32>, vector<24x24xf32>, vector<8x24xf32> -> vector<8x24xf32>
    %c5 = arith.constant 5 : index
    %c0_27 = arith.constant 0 : index
    %48 = vector.load %arg5[%c5, %c0_27] : memref<19x24xf32, #tpu.memory_space<vmem>>, vector<1x24xf32>
    %49 = vector.broadcast %48 : vector<1x24xf32> to vector<8x24xf32>
    %50 = arith.addf %47, %49 : vector<8x24xf32>
    %cst_28 = arith.constant 0.000000e+00 : f32
    %51 = vector.broadcast %cst_28 : f32 to vector<8x24xf32>
    %52 = arith.maximumf %50, %51 : vector<8x24xf32>
    %c3_29 = arith.constant 3 : index
    %c0_30 = arith.constant 0 : index
    %c0_31 = arith.constant 0 : index
    %53 = vector.load %arg4[%c3_29, %c0_30, %c0_31] : memref<9x24x24xf32, #tpu.memory_space<vmem>>, vector<1x24x24xf32>
    %54 = vector.shape_cast %53 : vector<1x24x24xf32> to vector<24x24xf32>
    %cst_32 = arith.constant dense<0.000000e+00> : vector<8x24xf32>
    %55 = tpu.matmul %52, %54, %cst_32 {dimension_numbers = #tpu.dot_dimension_numbers<[1], [0], [0], [1], [0, 0, 1, 1], [], []>} : vector<8x24xf32>, vector<24x24xf32>, vector<8x24xf32> -> vector<8x24xf32>
    %c6 = arith.constant 6 : index
    %c0_33 = arith.constant 0 : index
    %56 = vector.load %arg5[%c6, %c0_33] : memref<19x24xf32, #tpu.memory_space<vmem>>, vector<1x24xf32>
    %57 = vector.broadcast %56 : vector<1x24xf32> to vector<8x24xf32>
    %58 = arith.addf %55, %57 : vector<8x24xf32>
    %cst_34 = arith.constant dense<0.000000e+00> : vector<8xf32>
    %59 = vector.multi_reduction <add>, %58, %cst_34 [1] : vector<8x24xf32> to vector<8xf32>
    %60 = vector.shape_cast %59 : vector<8xf32> to vector<8x1xf32>
    %61 = arith.mulf %58, %58 : vector<8x24xf32>
    %cst_35 = arith.constant dense<0.000000e+00> : vector<8xf32>
    %62 = vector.multi_reduction <add>, %61, %cst_35 [1] : vector<8x24xf32> to vector<8xf32>
    %63 = vector.shape_cast %62 : vector<8xf32> to vector<8x1xf32>
    %cst_36 = arith.constant 0.0416666679 : f32
    %64 = vector.broadcast %cst_36 : f32 to vector<8x1xf32>
    %65 = arith.mulf %60, %64 : vector<8x1xf32>
    %cst_37 = arith.constant 0.0416666679 : f32
    %66 = vector.broadcast %cst_37 : f32 to vector<8x1xf32>
    %67 = arith.mulf %63, %66 : vector<8x1xf32>
    %68 = arith.mulf %65, %65 : vector<8x1xf32>
    %69 = arith.subf %67, %68 : vector<8x1xf32>
    %70 = vector.broadcast %65 : vector<8x1xf32> to vector<8x24xf32>
    %71 = arith.subf %58, %70 : vector<8x24xf32>
    %cst_38 = arith.constant 9.99999974E-6 : f32
    %72 = vector.broadcast %cst_38 : f32 to vector<8x1xf32>
    %73 = arith.addf %69, %72 : vector<8x1xf32>
    %74 = math.rsqrt %73 : vector<8x1xf32>
    %75 = vector.broadcast %74 : vector<8x1xf32> to vector<8x24xf32>
    %76 = arith.mulf %71, %75 : vector<8x24xf32>
    %c7 = arith.constant 7 : index
    %c0_39 = arith.constant 0 : index
    %77 = vector.load %arg5[%c7, %c0_39] : memref<19x24xf32, #tpu.memory_space<vmem>>, vector<1x24xf32>
    %78 = vector.broadcast %77 : vector<1x24xf32> to vector<8x24xf32>
    %79 = arith.mulf %76, %78 : vector<8x24xf32>
    %c8 = arith.constant 8 : index
    %c0_40 = arith.constant 0 : index
    %80 = vector.load %arg5[%c8, %c0_40] : memref<19x24xf32, #tpu.memory_space<vmem>>, vector<1x24xf32>
    %81 = vector.broadcast %80 : vector<1x24xf32> to vector<8x24xf32>
    %82 = arith.addf %79, %81 : vector<8x24xf32>
    %83 = arith.addf %82, %44 : vector<8x24xf32>
    %c4_41 = arith.constant 4 : index
    %c0_42 = arith.constant 0 : index
    %c0_43 = arith.constant 0 : index
    %84 = vector.load %arg4[%c4_41, %c0_42, %c0_43] : memref<9x24x24xf32, #tpu.memory_space<vmem>>, vector<1x24x24xf32>
    %85 = vector.shape_cast %84 : vector<1x24x24xf32> to vector<24x24xf32>
    %cst_44 = arith.constant dense<0.000000e+00> : vector<8x24xf32>
    %86 = tpu.matmul %83, %85, %cst_44 {dimension_numbers = #tpu.dot_dimension_numbers<[1], [0], [0], [1], [0, 0, 1, 1], [], []>} : vector<8x24xf32>, vector<24x24xf32>, vector<8x24xf32> -> vector<8x24xf32>
    %c0_45 = arith.constant 0 : index
    %c0_46 = arith.constant 0 : index
    %87 = vector.load %arg2[%c0_45, %c0_46] : memref<8x1xf32, #tpu.memory_space<vmem>>, vector<8x1xf32>
    %c9 = arith.constant 9 : index
    %c0_47 = arith.constant 0 : index
    %88 = vector.load %arg5[%c9, %c0_47] : memref<19x24xf32, #tpu.memory_space<vmem>>, vector<1x24xf32>
    %89 = vector.broadcast %87 : vector<8x1xf32> to vector<8x24xf32>
    %90 = vector.broadcast %88 : vector<1x24xf32> to vector<8x24xf32>
    %91 = arith.mulf %89, %90 : vector<8x24xf32>
    %92 = arith.addf %86, %91 : vector<8x24xf32>
    %c10 = arith.constant 10 : index
    %c0_48 = arith.constant 0 : index
    %93 = vector.load %arg5[%c10, %c0_48] : memref<19x24xf32, #tpu.memory_space<vmem>>, vector<1x24xf32>
    %94 = vector.broadcast %93 : vector<1x24xf32> to vector<8x24xf32>
    %95 = arith.addf %92, %94 : vector<8x24xf32>
    %c5_49 = arith.constant 5 : index
    %c0_50 = arith.constant 0 : index
    %c0_51 = arith.constant 0 : index
    %96 = vector.load %arg4[%c5_49, %c0_50, %c0_51] : memref<9x24x24xf32, #tpu.memory_space<vmem>>, vector<1x24x24xf32>
    %97 = vector.shape_cast %96 : vector<1x24x24xf32> to vector<24x24xf32>
    %cst_52 = arith.constant dense<0.000000e+00> : vector<8x24xf32>
    %98 = tpu.matmul %95, %97, %cst_52 {dimension_numbers = #tpu.dot_dimension_numbers<[1], [0], [0], [1], [0, 0, 1, 1], [], []>} : vector<8x24xf32>, vector<24x24xf32>, vector<8x24xf32> -> vector<8x24xf32>
    %c11 = arith.constant 11 : index
    %c0_53 = arith.constant 0 : index
    %99 = vector.load %arg5[%c11, %c0_53] : memref<19x24xf32, #tpu.memory_space<vmem>>, vector<1x24xf32>
    %100 = vector.broadcast %99 : vector<1x24xf32> to vector<8x24xf32>
    %101 = arith.addf %98, %100 : vector<8x24xf32>
    %cst_54 = arith.constant 0.000000e+00 : f32
    %102 = vector.broadcast %cst_54 : f32 to vector<8x24xf32>
    %103 = arith.maximumf %101, %102 : vector<8x24xf32>
    %c6_55 = arith.constant 6 : index
    %c0_56 = arith.constant 0 : index
    %c0_57 = arith.constant 0 : index
    %104 = vector.load %arg4[%c6_55, %c0_56, %c0_57] : memref<9x24x24xf32, #tpu.memory_space<vmem>>, vector<1x24x24xf32>
    %105 = vector.shape_cast %104 : vector<1x24x24xf32> to vector<24x24xf32>
    %cst_58 = arith.constant dense<0.000000e+00> : vector<8x24xf32>
    %106 = tpu.matmul %103, %105, %cst_58 {dimension_numbers = #tpu.dot_dimension_numbers<[1], [0], [0], [1], [0, 0, 1, 1], [], []>} : vector<8x24xf32>, vector<24x24xf32>, vector<8x24xf32> -> vector<8x24xf32>
    %c12 = arith.constant 12 : index
    %c0_59 = arith.constant 0 : index
    %107 = vector.load %arg5[%c12, %c0_59] : memref<19x24xf32, #tpu.memory_space<vmem>>, vector<1x24xf32>
    %108 = vector.broadcast %107 : vector<1x24xf32> to vector<8x24xf32>
    %109 = arith.addf %106, %108 : vector<8x24xf32>
    %cst_60 = arith.constant dense<0.000000e+00> : vector<8xf32>
    %110 = vector.multi_reduction <add>, %109, %cst_60 [1] : vector<8x24xf32> to vector<8xf32>
    %111 = vector.shape_cast %110 : vector<8xf32> to vector<8x1xf32>
    %112 = arith.mulf %109, %109 : vector<8x24xf32>
    %cst_61 = arith.constant dense<0.000000e+00> : vector<8xf32>
    %113 = vector.multi_reduction <add>, %112, %cst_61 [1] : vector<8x24xf32> to vector<8xf32>
    %114 = vector.shape_cast %113 : vector<8xf32> to vector<8x1xf32>
    %cst_62 = arith.constant 0.0416666679 : f32
    %115 = vector.broadcast %cst_62 : f32 to vector<8x1xf32>
    %116 = arith.mulf %111, %115 : vector<8x1xf32>
    %cst_63 = arith.constant 0.0416666679 : f32
    %117 = vector.broadcast %cst_63 : f32 to vector<8x1xf32>
    %118 = arith.mulf %114, %117 : vector<8x1xf32>
    %119 = arith.mulf %116, %116 : vector<8x1xf32>
    %120 = arith.subf %118, %119 : vector<8x1xf32>
    %121 = vector.broadcast %116 : vector<8x1xf32> to vector<8x24xf32>
    %122 = arith.subf %109, %121 : vector<8x24xf32>
    %cst_64 = arith.constant 9.99999974E-6 : f32
    %123 = vector.broadcast %cst_64 : f32 to vector<8x1xf32>
    %124 = arith.addf %120, %123 : vector<8x1xf32>
    %125 = math.rsqrt %124 : vector<8x1xf32>
    %126 = vector.broadcast %125 : vector<8x1xf32> to vector<8x24xf32>
    %127 = arith.mulf %122, %126 : vector<8x24xf32>
    %c13 = arith.constant 13 : index
    %c0_65 = arith.constant 0 : index
    %128 = vector.load %arg5[%c13, %c0_65] : memref<19x24xf32, #tpu.memory_space<vmem>>, vector<1x24xf32>
    %129 = vector.broadcast %128 : vector<1x24xf32> to vector<8x24xf32>
    %130 = arith.mulf %127, %129 : vector<8x24xf32>
    %c14 = arith.constant 14 : index
    %c0_66 = arith.constant 0 : index
    %131 = vector.load %arg5[%c14, %c0_66] : memref<19x24xf32, #tpu.memory_space<vmem>>, vector<1x24xf32>
    %132 = vector.broadcast %131 : vector<1x24xf32> to vector<8x24xf32>
    %133 = arith.addf %130, %132 : vector<8x24xf32>
    %134 = arith.addf %133, %95 : vector<8x24xf32>
    %c7_67 = arith.constant 7 : index
    %c0_68 = arith.constant 0 : index
    %c0_69 = arith.constant 0 : index
    %135 = vector.load %arg4[%c7_67, %c0_68, %c0_69] : memref<9x24x24xf32, #tpu.memory_space<vmem>>, vector<1x24x24xf32>
    %136 = vector.shape_cast %135 : vector<1x24x24xf32> to vector<24x24xf32>
    %cst_70 = arith.constant dense<0.000000e+00> : vector<8x24xf32>
    %137 = tpu.matmul %134, %136, %cst_70 {dimension_numbers = #tpu.dot_dimension_numbers<[1], [0], [0], [1], [0, 0, 1, 1], [], []>} : vector<8x24xf32>, vector<24x24xf32>, vector<8x24xf32> -> vector<8x24xf32>
    %c15 = arith.constant 15 : index
    %c0_71 = arith.constant 0 : index
    %138 = vector.load %arg5[%c15, %c0_71] : memref<19x24xf32, #tpu.memory_space<vmem>>, vector<1x24xf32>
    %139 = vector.broadcast %138 : vector<1x24xf32> to vector<8x24xf32>
    %140 = arith.addf %137, %139 : vector<8x24xf32>
    %cst_72 = arith.constant 0.000000e+00 : f32
    %141 = vector.broadcast %cst_72 : f32 to vector<8x24xf32>
    %142 = arith.maximumf %140, %141 : vector<8x24xf32>
    %c8_73 = arith.constant 8 : index
    %c0_74 = arith.constant 0 : index
    %c0_75 = arith.constant 0 : index
    %143 = vector.load %arg4[%c8_73, %c0_74, %c0_75] : memref<9x24x24xf32, #tpu.memory_space<vmem>>, vector<1x24x24xf32>
    %144 = vector.shape_cast %143 : vector<1x24x24xf32> to vector<24x24xf32>
    %cst_76 = arith.constant dense<0.000000e+00> : vector<8x24xf32>
    %145 = tpu.matmul %142, %144, %cst_76 {dimension_numbers = #tpu.dot_dimension_numbers<[1], [0], [0], [1], [0, 0, 1, 1], [], []>} : vector<8x24xf32>, vector<24x24xf32>, vector<8x24xf32> -> vector<8x24xf32>
    %c16 = arith.constant 16 : index
    %c0_77 = arith.constant 0 : index
    %146 = vector.load %arg5[%c16, %c0_77] : memref<19x24xf32, #tpu.memory_space<vmem>>, vector<1x24xf32>
    %147 = vector.broadcast %146 : vector<1x24xf32> to vector<8x24xf32>
    %148 = arith.addf %145, %147 : vector<8x24xf32>
    %cst_78 = arith.constant dense<0.000000e+00> : vector<8xf32>
    %149 = vector.multi_reduction <add>, %148, %cst_78 [1] : vector<8x24xf32> to vector<8xf32>
    %150 = vector.shape_cast %149 : vector<8xf32> to vector<8x1xf32>
    %151 = arith.mulf %148, %148 : vector<8x24xf32>
    %cst_79 = arith.constant dense<0.000000e+00> : vector<8xf32>
    %152 = vector.multi_reduction <add>, %151, %cst_79 [1] : vector<8x24xf32> to vector<8xf32>
    %153 = vector.shape_cast %152 : vector<8xf32> to vector<8x1xf32>
    %cst_80 = arith.constant 0.0416666679 : f32
    %154 = vector.broadcast %cst_80 : f32 to vector<8x1xf32>
    %155 = arith.mulf %150, %154 : vector<8x1xf32>
    %cst_81 = arith.constant 0.0416666679 : f32
    %156 = vector.broadcast %cst_81 : f32 to vector<8x1xf32>
    %157 = arith.mulf %153, %156 : vector<8x1xf32>
    %158 = arith.mulf %155, %155 : vector<8x1xf32>
    %159 = arith.subf %157, %158 : vector<8x1xf32>
    %160 = vector.broadcast %155 : vector<8x1xf32> to vector<8x24xf32>
    %161 = arith.subf %148, %160 : vector<8x24xf32>
    %cst_82 = arith.constant 9.99999974E-6 : f32
    %162 = vector.broadcast %cst_82 : f32 to vector<8x1xf32>
    %163 = arith.addf %159, %162 : vector<8x1xf32>
    %164 = math.rsqrt %163 : vector<8x1xf32>
    %165 = vector.broadcast %164 : vector<8x1xf32> to vector<8x24xf32>
    %166 = arith.mulf %161, %165 : vector<8x24xf32>
    %c17 = arith.constant 17 : index
    %c0_83 = arith.constant 0 : index
    %167 = vector.load %arg5[%c17, %c0_83] : memref<19x24xf32, #tpu.memory_space<vmem>>, vector<1x24xf32>
    %168 = vector.broadcast %167 : vector<1x24xf32> to vector<8x24xf32>
    %169 = arith.mulf %166, %168 : vector<8x24xf32>
    %c18 = arith.constant 18 : index
    %c0_84 = arith.constant 0 : index
    %170 = vector.load %arg5[%c18, %c0_84] : memref<19x24xf32, #tpu.memory_space<vmem>>, vector<1x24xf32>
    %171 = vector.broadcast %170 : vector<1x24xf32> to vector<8x24xf32>
    %172 = arith.addf %169, %171 : vector<8x24xf32>
    %173 = arith.addf %172, %134 : vector<8x24xf32>
    %c0_85 = arith.constant 0 : index
    %c0_86 = arith.constant 0 : index
    %174 = vector.load %arg6[%c0_85, %c0_86] : memref<24x128xf32, #tpu.memory_space<vmem>>, vector<24x128xf32>
    %cst_87 = arith.constant dense<0.000000e+00> : vector<8x128xf32>
    %175 = tpu.matmul %173, %174, %cst_87 {dimension_numbers = #tpu.dot_dimension_numbers<[1], [0], [0], [1], [0, 0, 1, 1], [], []>} : vector<8x24xf32>, vector<24x128xf32>, vector<8x128xf32> -> vector<8x128xf32>
    %c0_88 = arith.constant 0 : index
    %c0_89 = arith.constant 0 : index
    %176 = vector.load %arg7[%c0_88, %c0_89] : memref<1x128xf32, #tpu.memory_space<vmem>>, vector<1x128xf32>
    %177 = vector.broadcast %176 : vector<1x128xf32> to vector<8x128xf32>
    %178 = arith.addf %175, %177 : vector<8x128xf32>
    %c0_90 = arith.constant 0 : index
    %c0_91 = arith.constant 0 : index
    %179 = vector.load %arg8[%c0_90, %c0_91] : memref<8x128xf32, #tpu.memory_space<vmem>>, vector<8x128xf32>
    tpu.vector_store %arg8[%c0_90, %c0_91], %178 {strides = array<i32>} : memref<8x128xf32, #tpu.memory_space<vmem>>, vector<8x128xf32>,
    return
  }
  func.func @transform_0(%arg0: i32) -> (i32, i32) {
    %c0_i32 = arith.constant 0 : i32
    %c0_i32_0 = arith.constant 0 : i32
    return %arg0, %c0_i32 : i32, i32
  }
  func.func @transform_1(%arg0: i32) -> (i32, i32) {
    %c0_i32 = arith.constant 0 : i32
    %c0_i32_0 = arith.constant 0 : i32
    return %arg0, %c0_i32 : i32, i32
  }
  func.func @transform_2(%arg0: i32) -> (i32, i32) {
    %c0_i32 = arith.constant 0 : i32
    %c0_i32_0 = arith.constant 0 : i32
    %c0_i32_1 = arith.constant 0 : i32
    return %c0_i32, %c0_i32_0 : i32, i32
  }
  func.func @transform_3(%arg0: i32) -> (i32, i32, i32) {
    %c0_i32 = arith.constant 0 : i32
    %c0_i32_0 = arith.constant 0 : i32
    %c0_i32_1 = arith.constant 0 : i32
    %c0_i32_2 = arith.constant 0 : i32
    return %c0_i32, %c0_i32_0, %c0_i32_1 : i32, i32, i32
  }
  func.func @transform_4(%arg0: i32) -> (i32, i32) {
    %c0_i32 = arith.constant 0 : i32
    %c0_i32_0 = arith.constant 0 : i32
    %c0_i32_1 = arith.constant 0 : i32
    return %c0_i32, %c0_i32_0 : i32, i32
  }
  func.func @transform_5(%arg0: i32) -> (i32, i32) {
    %c0_i32 = arith.constant 0 : i32
    %c0_i32_0 = arith.constant 0 : i32
    %c0_i32_1 = arith.constant 0 : i32
    return %c0_i32, %c0_i32_0 : i32, i32
  }
  func.func @transform_6(%arg0: i32) -> (i32, i32) {
    %c0_i32 = arith.constant 0 : i32
    %c0_i32_0 = arith.constant 0 : i32
    %c0_i32_1 = arith.constant 0 : i32
    return %c0_i32, %c0_i32_0 : i32, i32
  }
  func.func @transform_7(%arg0: i32) -> (i32, i32) {
    %c0_i32 = arith.constant 0 : i32
    %c0_i32_0 = arith.constant 0 : i32
    return %arg0, %c0_i32 : i32, i32
  }
}

</mosaic_0001>

<bundles_post_ra>
// kernel: tpu_custom_call.1
= control target key start
LH: loop header
LB: loop body
LE: loop exit
PB: predicated region body
PF: predicated region fallthrough
CT: control target
= control target key end

     0   :  { %12 = vsyncpa [#allocation3], 0  ;;  %s1633_s0 = inlined_call_operand.vmem [shape: f32[8,128], index: 0, kind: input, shape index: {}]   ;;  %s1634_s1 = inlined_call_operand.vmem [shape: f32[8,1], index: 1, kind: input, shape index: {}]   ;;  %s1635_s2 = inlined_call_operand.vmem [shape: f32[128,24], index: 2, kind: input, shape index: {}]   ;;  %s1636_s3 = inlined_call_operand.hbm [shape: f32[9,24,24], index: 3, kind: input, shape index: {}]   ;;  %s1637_s4 = inlined_call_operand.vmem [shape: f32[19,24], index: 4, kind: input, shape index: {}]   ;;  %s1638_s5 = inlined_call_operand.vmem [shape: f32[24,128], index: 5, kind: input, shape index: {}]   ;;  %s1639_s6 = inlined_call_operand.vmem [shape: f32[1,128], index: 6, kind: input, shape index: {}]   ;;  %s1640_s7 = inlined_call_operand.hbm [shape: f32[8,128], index: 7, kind: output, shape index: {}]  }
   0x1   :  { %13 = vsyncpa [#allocation4], 0  ;;  %s1371_s24 = smov [#allocation2]  }
   0x2   :  { %s25_s25 = sshll.u32 %s1371_s24, 4  ;;  %s26_s25 = int_to_ptr.vmem [resolvable:$true] %s25_s25 }
   0x3   :  { %s1335_s26 = scalar_lea.vmem %s26_s25, 3456  ;;  %p1340_p1 = scmp.lt.s32.totalorder %s26_s25, %s26_s25 }
   0x4   :  { %p1336_p0 = scmp.ne.s32.totalorder %s26_s25, %s1335_s26  ;;  %p1341_p2 = scmp.lt.s32.totalorder %s1335_s26, %s1335_s26 }
   0x6   :  { %p1342_p3 = por %p1341_p2, %p1340_p1 }
   0x8   :  { %p1343_p4 = pnand %p1342_p3, %p1336_p0 }
   0xa   :  { %1346 = shalt.err (!%p1343_p4)
}
   0xb   :  { %s1372_s27 = smov 128   ;;  %s1373_s28 = smov 8  }
   0xc   :  { %31 = dma.hbm_to_vmem [thread:$0]  %s1636_s3, 3456, %s26_s25, [#allocation3], %s1372_s27, %s1372_s27, %s1373_s28  }
   0xd   :  { %1367 = dma.done.wait [#allocation3], 3456  }
   0xe   :  { %1368 = vsyncadd [#allocation3], 4294963840  ;;  %v1374_v0 = vmov 0.0   ;;  %vm1375_vm0 = vmmov 0   ;;  %v57_v1 = vld [vmem:[%s1635_s2 + $0x78] sm:$0xff]  ;;  %v56_v2 = vld [vmem:[%s1635_s2 + $0x70] sm:$0xff] }
   0xf   :  { %1186 = vmatprep.subr.mxu0 %v1374_v0  ;;  %1218 = vmatprep.mubr.msk.f32.mxu0 %vm1375_vm0, %v1374_v0  ;;  %v55_v3 = vld [vmem:[%s1635_s2 + $0x68] sm:$0xff]  ;;  %v54_v4 = vld [vmem:[%s1635_s2 + $0x60] sm:$0xff]  ;;  %v135_v5 = vld [vmem:[#allocation2 + $0x10] sm:$0xff]  ;;  %vm141_vm1 = vcmask 195584   ;;  %s1377_s3 = smov [#allocation5]  }
  0x10   :  { %1221 = vmatprep.subr.mxu1 %v1374_v0  ;;  %1227 = vmatprep.mubr.msk.f32.mxu1 %vm1375_vm0, %v1374_v0  ;;  %v53_v6 = vld [vmem:[%s1635_s2 + $0x58] sm:$0xff]  ;;  %v52_v7 = vld [vmem:[%s1635_s2 + $0x50] sm:$0xff]  ;;  %v51_v8 = vld [vmem:[%s1635_s2 + $0x48] sm:$0xff]  ;;  %s1090_s11 = sshll.u32 %s1377_s3, 4  ;;  %s1091_s11 = int_to_ptr.vmem [resolvable:$true] %s1090_s11 }
  0x11   :  { %1187 = vmatpush3.msra.mxu0 %v57_v1  ;;  %1222 = vmatpush3.msra.mxu1 %v135_v5  ;;  %v50_v9 = vld [vmem:[%s1635_s2 + $0x40] sm:$0xff]  ;;  %v49_v10 = vld [vmem:[%s1635_s2 + $0x38] sm:$0xff]  ;;  %v48_v11 = vld [vmem:[%s1635_s2 + $0x30] sm:$0xff]  ;;  %s1347_s12 = scalar_lea.vmem %s1091_s11, 128  ;;  %p1352_p6 = scmp.lt.s32.totalorder %s1091_s11, %s1091_s11 }
  0x12   :  { %1188 = vmatprep.subr.mxu0 %v1374_v0  ;;  %1223 = vmatprep.subr.mxu1 %v1374_v0  ;;  %v47_v12 = vld [vmem:[%s1635_s2 + $0x28] sm:$0xff]  ;;  %v46_v13 = vld [vmem:[%s1635_s2 + $0x20] sm:$0xff]  ;;  %v45_v14 = vld [vmem:[%s1635_s2 + $0x18] sm:$0xff]  ;;  %p1348_p5 = scmp.ne.s32.totalorder %s1091_s11, %s1347_s12  ;;  %p1353_p7 = scmp.lt.s32.totalorder %s1347_s12, %s1347_s12 }
  0x13   :  { %1189 = vmatpush3.msra.mxu0 %v56_v2  ;;  %v44_v15 = vld [vmem:[%s1635_s2 + $0x10] sm:$0xff]  ;;  %v43_v16 = vld [vmem:[%s1635_s2 + $0x8] sm:$0xff]  ;;  %v42_v17 = vld [vmem:[%s1635_s2] sm:$0xff] }
  0x14   :  { %1190 = vmatprep.subr.mxu0 %v1374_v0  ;;  %v41_v18 = vld [vmem:[%s1633_s0] sm:$0xff]  ;;  %v134_v19 = vld [vmem:[#allocation2 + $0x8] sm:$0xff]  ;;  %v217_v27 = vld [vmem:[#allocation2 + $0x18] sm:$0xff]  ;;  %p1354_p8 = por %p1353_p7, %p1352_p6 }
  0x15   :  { %1191 = vmatpush3.msra.mxu0 %v55_v3  ;;  %1224 = vmatpush3.msra.mxu1 %v134_v19  ;;  %v133_v20 = vld [vmem:[#allocation2] sm:$0xff]  ;;  %v219_v25 = vld [vmem:[#allocation2 + $0x28] sm:$0xff]  ;;  %v328_v41 = vld [vmem:[#allocation2 + $0x38] sm:$0xff] }
  0x16   :  { %1192 = vmatprep.subr.mxu0 %v1374_v0  ;;  %1225 = vmatprep.subr.mxu1 %v1374_v0  ;;  %v1099_v21 = vld [vmem:[%s1637_s4] ss:$0 sm:$0xff]  ;;  %v1100_v28 = vld [vmem:[%s1637_s4 + $0x1] ss:$0 sm:$0xff]  ;;  %v1102_v33 = vld [vmem:[%s1637_s4 + $0x2] ss:$0 sm:$0xff]  ;;  %p1355_p9 = pnand %p1354_p8, %p1348_p5 }
  0x17   :  { %1193 = vmatpush3.msra.mxu0 %v54_v4  ;;  %1226 = vmatpush3.msra.mxu1 %v133_v20  ;;  %v218_v26 = vld [vmem:[#allocation2 + $0x20] sm:$0xff]  ;;  %v327_v42 = vld [vmem:[#allocation2 + $0x30] sm:$0xff]  ;;  %v412_v58 = vld [vmem:[#allocation2 + $0x58] sm:$0xff] }
  0x18   :  { %1194 = vmatprep.subr.mxu0 %v1374_v0  ;;  %1230 = vmatprep.subr.mxu1 %v1374_v0  ;;  %v329_v40 = vld [vmem:[#allocation2 + $0x40] sm:$0xff]  ;;  %v411_v59 = vld [vmem:[#allocation2 + $0x50] sm:$0xff]  ;;  %v410_v60 = vld [vmem:[#allocation2 + $0x48] sm:$0xff] }
  0x19   :  { %1195 = vmatpush3.msra.mxu0 %v53_v6  ;;  %v1104_v52 = vld [vmem:[%s1637_s4 + $0x3] ss:$0 sm:$0xff]  ;;  %v1105_v54 = vld [vmem:[%s1637_s4 + $0x4] ss:$0 sm:$0xff]  ;;  %v1106_v61 = vld [vmem:[%s1637_s4 + $0x5] ss:$0 sm:$0xff] }
  0x1a   :  { %1196 = vmatprep.subr.mxu0 %v1374_v0  ;;  %v1108_v3 = vld [vmem:[%s1637_s4 + $0x6] ss:$0 sm:$0xff] }
  0x1b   :  { %1197 = vmatpush3.msra.mxu0 %v52_v7 }
  0x1c   :  { %1198 = vmatprep.subr.mxu0 %v1374_v0 }
  0x1d   :  { %1199 = vmatpush3.msra.mxu0 %v51_v8 }
  0x1e   :  { %1200 = vmatprep.subr.mxu0 %v1374_v0 }
  0x1f   :  { %1201 = vmatpush3.msra.mxu0 %v50_v9 }
  0x20   :  { %1202 = vmatprep.subr.mxu0 %v1374_v0 }
  0x21   :  { %1203 = vmatpush3.msra.mxu0 %v49_v10  ;;  %v522_v10 = vld [vmem:[#allocation2 + $0x70] sm:$0xff] }
  0x22   :  { %1204 = vmatprep.subr.mxu0 %v1374_v0 }
  0x23   :  { %1205 = vmatpush3.msra.mxu0 %v48_v11  ;;  %v521_v11 = vld [vmem:[#allocation2 + $0x68] sm:$0xff] }
  0x24   :  { %1206 = vmatprep.subr.mxu0 %v1374_v0 }
  0x25   :  { %1207 = vmatpush3.msra.mxu0 %v47_v12  ;;  %v520_v12 = vld [vmem:[#allocation2 + $0x60] sm:$0xff] }
  0x26   :  { %1208 = vmatprep.subr.mxu0 %v1374_v0 }
  0x27   :  { %1209 = vmatpush3.msra.mxu0 %v46_v13  ;;  %v523_v13 = vld [vmem:[%s1634_s1] sm:$0xff] }
  0x28   :  { %1210 = vmatprep.subr.mxu0 %v1374_v0 }
  0x29   :  { %1211 = vmatpush3.msra.mxu0 %v45_v14  ;;  %v1376_v14 = vmov 0  }
  0x2a   :  { %1212 = vmatprep.subr.mxu0 %v1374_v0  ;;  %1318 = vset.pattern.permute.xlu0 %v1376_v14  ;;  %v1121_v14 = vld [vmem:[%s1637_s4 + $0xf] ss:$0 sm:$0xff] }
  0x2b   :  { %1213 = vmatpush3.msra.mxu0 %v44_v15 }
  0x2c   :  { %1214 = vmatprep.subr.mxu0 %v1374_v0 }
  0x2d   :  { %1215 = vmatpush3.msra.mxu0 %v43_v16 }
  0x2e   :  { %1216 = vmatprep.subr.mxu0 %v1374_v0 }
  0x2f   :  { %1217 = vmatpush3.msra.mxu0 %v42_v17 }
  0x30   :  { %1219 = vmatmul.mubr.f32.vlgmr.msra.gmra.mxu0 %v41_v18  ;;  %1275 = vmatprep.subr.mxu0 %v1374_v0 }
  0x31   :  { %1281 = vmatprep.mubr.msk.f32.mxu0 %vm1375_vm0, %v1374_v0 }
  0xf0   :  { %v129_v22 = vpop.f32.mrf.mxu0 }
  0xf1   :  { %v130_v23 = vadd.f32 %v1099_v21, %v129_v22 }
  0xf2   :  { %v1220_v24 = vpop.f32.mrf.mxu0 }
  0xf3   :  { %1228 = vmatmul.mubr.msk.f32.vlgmr.msra.gmra.mxu1 %vm141_vm1, %v130_v23  ;;  %v1110_v24 = vld [vmem:[%s1637_s4 + $0x7] ss:$0 sm:$0xff] }
  0xf4   :  { %1236 = vmatprep.mubr.msk.f32.mxu1 %vm1375_vm0, %v1374_v0  ;;  %1231 = vmatpush3.msra.mxu1 %v219_v25 }
  0xf5   :  { %1232 = vmatprep.subr.mxu1 %v1374_v0 }
  0xf6   :  { %1233 = vmatpush3.msra.mxu1 %v218_v26  ;;  %v1111_v26 = vld [vmem:[%s1637_s4 + $0x8] ss:$0 sm:$0xff] }
  0xf7   :  { %1234 = vmatprep.subr.mxu1 %v1374_v0 }
  0xf8   :  { %1235 = vmatpush3.msra.mxu1 %v217_v27 }
  0xf9   :  { %1239 = vmatprep.subr.mxu1 %v1374_v0 }
 0x1b3   :  { %v211_v29 = vpop.f32.mrf.mxu1 }
 0x1b4   :  { %v212_v30 = vadd.f32 %v1100_v28, %v211_v29 }
 0x1b5   :  { %v1229_v31 = vpop.f32.mrf.mxu1 }
 0x1b6   :  { %v215_v32 = vmax.f32 %v212_v30, 0.0  ;;  %v617_v30 = vld [vmem:[#allocation2 + $0x88] sm:$0xff]  ;;  %v616_v31 = vld [vmem:[#allocation2 + $0x80] sm:$0xff] }
 0x1b8   :  { %1237 = vmatmul.mubr.msk.f32.vlgmr.msra.gmra.mxu1 %vm141_vm1, %v215_v32  ;;  %v615_v32 = vld [vmem:[#allocation2 + $0x78] sm:$0xff] }
 0x1b9   :  { %1245 = vmatprep.mubr.msk.f32.mxu1 %vm1375_vm0, %v1374_v0  ;;  %1240 = vmatpush3.msra.mxu1 %v329_v40 }
 0x1ba   :  { %1241 = vmatprep.subr.mxu1 %v1374_v0 }
 0x1bb   :  { %1242 = vmatpush3.msra.mxu1 %v328_v41  ;;  %v700_v41 = vld [vmem:[#allocation2 + $0xa0] sm:$0xff] }
 0x1bc   :  { %1243 = vmatprep.subr.mxu1 %v1374_v0  ;;  %1276 = vmatpush3.msra.mxu0 %v700_v41 }
 0x1bd   :  { %1244 = vmatpush3.msra.mxu1 %v327_v42  ;;  %1277 = vmatprep.subr.mxu0 %v1374_v0  ;;  %v699_v42 = vld [vmem:[#allocation2 + $0x98] sm:$0xff] }
 0x1be   :  { %1248 = vmatprep.subr.mxu1 %v1374_v0  ;;  %1278 = vmatpush3.msra.mxu0 %v699_v42 }
 0x1bf   :  { %1279 = vmatprep.subr.mxu0 %v1374_v0 }
 0x278   :  { %v294_v34 = vpop.f32.mrf.mxu1 }
 0x279   :  { %v295_v35 = vadd.f32 %v1102_v33, %v294_v34  ;;  %v1112_v33 = vld [vmem:[%s1637_s4 + $0x9] ss:$0 sm:$0xff] }
 0x27a   :  { %v1238_v36 = vpop.f32.mrf.mxu1 }
 0x27b   :  { %v298_v37 = vsel %vm141_vm1, %v295_v35, 0.0  ;;  %v301_v38 = vmul.f32 %v295_v35, %v295_v35 }
 0x27c   :  { %299 = vadd.xlane.f32.xlu0 %v298_v37  ;;  %v1114_v37 = vld [vmem:[%s1637_s4 + $0xa] ss:$0 sm:$0xff] }
 0x27d   :  { %v302_v39 = vsel %vm141_vm1, %v301_v38, 0.0 }
 0x280   :  { %303 = vadd.xlane.f32.xlu0 %v302_v39 }
 0x296   :  { %527 = vperm.xlu0 %1318, %v523_v13   ;;  %v891_v13 = vld [vmem:[#allocation2 + $0xc0] sm:$0xff] }
 0x305   :  { %v300_v43 = vpop.xlane.xlu0 %299 }
 0x306   :  { %v305_v44 = vmul.f32 0.041666668, %v300_v43  ;;  %v698_v43 = vld [vmem:[#allocation2 + $0x90] sm:$0xff] }
 0x307   :  { %1280 = vmatpush3.msra.mxu0 %v698_v43  ;;  %v1127_v43 = vld [vmem:[%s1639_s6] ss:$0 sm:$0xff] }
 0x308   :  { %v307_v46 = vmul.f32 %v305_v44, %v305_v44  ;;  %v309_v50 = vsub.f32 %v295_v35, %v305_v44  ;;  %1293 = vmatprep.subr.mxu0 %v1374_v0  ;;  %v1115_v44 = vld [vmem:[%s1637_s4 + $0xb] ss:$0 sm:$0xff] }
 0x309   :  { %v304_v45 = vpop.xlane.xlu0 %303 }
 0x30a   :  { %v306_v47 = vmul.f32 0.041666668, %v304_v45 }
 0x30c   :  { %v308_v48 = vsub.f32 %v306_v47, %v307_v46 }
 0x30e   :  { %v310_v49 = vadd.f32 1e-05, %v308_v48 }
 0x310   :  { %1319 = vrsqrt.f32 %v310_v49  ;;  %v1117_v49 = vld [vmem:[%s1637_s4 + $0xc] ss:$0 sm:$0xff] }
 0x311   :  { %v528_v34 = vpop.permute.xlu0 %527 }
 0x312   :  { %v534_v35 = vmul.f32 %v1112_v33, %v528_v34 }
 0x31d   :  { %v1320_v51 = vpop.eup %1319 }
 0x31e   :  { %v312_v53 = vmul.f32 %v1320_v51, %v309_v50 }
 0x320   :  { %v318_v55 = vmul.f32 %v1104_v52, %v312_v53 }
 0x322   :  { %v324_v56 = vadd.f32 %v1105_v54, %v318_v55 }
 0x324   :  { %v325_v57 = vadd.f32 %v324_v56, %v130_v23  ;;  %v810_v56 = vld [vmem:[#allocation2 + $0xb8] sm:$0xff] }
 0x326   :  { %1246 = vmatmul.mubr.msk.f32.vlgmr.msra.gmra.mxu1 %vm141_vm1, %v325_v57 }
 0x327   :  { %1254 = vmatprep.mubr.msk.f32.mxu1 %vm1375_vm0, %v1374_v0  ;;  %1249 = vmatpush3.msra.mxu1 %v412_v58  ;;  %v808_v58 = vld [vmem:[#allocation2 + $0xa8] sm:$0xff] }
 0x328   :  { %1250 = vmatprep.subr.mxu1 %v1374_v0 }
 0x329   :  { %1251 = vmatpush3.msra.mxu1 %v411_v59 }
 0x32a   :  { %1252 = vmatprep.subr.mxu1 %v1374_v0 }
 0x32b   :  { %1253 = vmatpush3.msra.mxu1 %v410_v60 }
 0x32c   :  { %1257 = vmatprep.subr.mxu1 %v1374_v0 }
 0x3e6   :  { %v404_v62 = vpop.f32.mrf.mxu1 }
 0x3e7   :  { %v405_v63 = vadd.f32 %v1106_v61, %v404_v62 }
 0x3e8   :  { %v1247_v1 = vpop.f32.mrf.mxu1 }
 0x3e9   :  { %v408_v2 = vmax.f32 %v405_v63, 0.0 }
 0x3eb   :  { %1255 = vmatmul.mubr.msk.f32.vlgmr.msra.gmra.mxu1 %vm141_vm1, %v408_v2 }
 0x3ec   :  { %1263 = vmatprep.mubr.msk.f32.mxu1 %vm1375_vm0, %v1374_v0  ;;  %1258 = vmatpush3.msra.mxu1 %v522_v10 }
 0x3ed   :  { %1259 = vmatprep.subr.mxu1 %v1374_v0 }
 0x3ee   :  { %1260 = vmatpush3.msra.mxu1 %v521_v11  ;;  %v893_v11 = vld [vmem:[#allocation2 + $0xd0] sm:$0xff] }
 0x3ef   :  { %1261 = vmatprep.subr.mxu1 %v1374_v0 }
 0x3f0   :  { %1262 = vmatpush3.msra.mxu1 %v520_v12  ;;  %v892_v12 = vld [vmem:[#allocation2 + $0xc8] sm:$0xff] }
 0x3f1   :  { %1266 = vmatprep.subr.mxu1 %v1374_v0 }
 0x4ab   :  { %v487_v4 = vpop.f32.mrf.mxu1 }
 0x4ac   :  { %v488_v5 = vadd.f32 %v1108_v3, %v487_v4 }
 0x4ad   :  { %v1256_v6 = vpop.f32.mrf.mxu1 }
 0x4ae   :  { %v491_v7 = vsel %vm141_vm1, %v488_v5, 0.0  ;;  %v494_v8 = vmul.f32 %v488_v5, %v488_v5 }
 0x4af   :  { %492 = vadd.xlane.f32.xlu1 %v491_v7  ;;  %v1120_v7 = vld [vmem:[%s1637_s4 + $0xe] ss:$0 sm:$0xff] }
 0x4b0   :  { %v495_v9 = vsel %vm141_vm1, %v494_v8, 0.0 }
 0x4b3   :  { %496 = vadd.xlane.f32.xlu1 %v495_v9 }
 0x538   :  { %v493_v15 = vpop.xlane.xlu1 %492 }
 0x539   :  { %v498_v16 = vmul.f32 0.041666668, %v493_v15 }
 0x53b   :  { %v500_v18 = vmul.f32 %v498_v16, %v498_v16  ;;  %v502_v22 = vsub.f32 %v488_v5, %v498_v16  ;;  %v1119_v5 = vld [vmem:[%s1637_s4 + $0xd] ss:$0 sm:$0xff] }
 0x53c   :  { %v497_v17 = vpop.xlane.xlu1 %496 }
 0x53d   :  { %v499_v19 = vmul.f32 0.041666668, %v497_v17 }
 0x53f   :  { %v501_v20 = vsub.f32 %v499_v19, %v500_v18  ;;  %v1123_v19 = vld [vmem:[%s1637_s4 + $0x10] ss:$0 sm:$0xff] }
 0x541   :  { %v503_v21 = vadd.f32 1e-05, %v501_v20 }
 0x543   :  { %1321 = vrsqrt.f32 %v503_v21 }
 0x550   :  { %v1322_v23 = vpop.eup %1321 }
 0x551   :  { %v505_v25 = vmul.f32 %v1322_v23, %v502_v22 }
 0x553   :  { %v511_v27 = vmul.f32 %v1110_v24, %v505_v25 }
 0x555   :  { %v517_v28 = vadd.f32 %v1111_v26, %v511_v27  ;;  %v1002_v26 = vld [vmem:[%s1638_s5 + $0x10] sm:$0xff]  ;;  %v1001_v27 = vld [vmem:[%s1638_s5 + $0x8] sm:$0xff] }
 0x557   :  { %v518_v29 = vadd.f32 %v517_v28, %v325_v57  ;;  %v809_v57 = vld [vmem:[#allocation2 + $0xb0] sm:$0xff]  ;;  %v1000_v28 = vld [vmem:[%s1638_s5] sm:$0xff] }
 0x559   :  { %1264 = vmatmul.mubr.msk.f32.vlgmr.msra.gmra.mxu1 %vm141_vm1, %v518_v29 }
 0x55a   :  { %1272 = vmatprep.mubr.msk.f32.mxu1 %vm1375_vm0, %v1374_v0  ;;  %1267 = vmatpush3.msra.mxu1 %v617_v30 }
 0x55b   :  { %1268 = vmatprep.subr.mxu1 %v1374_v0 }
 0x55c   :  { %1269 = vmatpush3.msra.mxu1 %v616_v31 }
 0x55d   :  { %1270 = vmatprep.subr.mxu1 %v1374_v0 }
 0x55e   :  { %1271 = vmatpush3.msra.mxu1 %v615_v32 }
 0x55f   :  { %1284 = vmatprep.subr.mxu1 %v1374_v0 }
 0x619   :  { %v604_v36 = vpop.f32.mrf.mxu1 }
 0x61a   :  { %v605_v38 = vadd.f32 %v604_v36, %v534_v35 }
 0x61b   :  { %v1265_v39 = vpop.f32.mrf.mxu1 }
 0x61c   :  { %v613_v40 = vadd.f32 %v1114_v37, %v605_v38  ;;  %v1125_v38 = vld [vmem:[%s1637_s4 + $0x11] ss:$0 sm:$0xff] }
 0x61e   :  { %1273 = vmatmul.mubr.msk.f32.vlgmr.msra.gmra.mxu1 %vm141_vm1, %v613_v40 }
 0x61f   :  { %1290 = vmatprep.mubr.msk.f32.mxu1 %vm1375_vm0, %v1374_v0  ;;  %1285 = vmatpush3.msra.mxu1 %v810_v56 }
 0x620   :  { %1286 = vmatprep.subr.mxu1 %v1374_v0 }
 0x621   :  { %1287 = vmatpush3.msra.mxu1 %v809_v57 }
 0x622   :  { %1288 = vmatprep.subr.mxu1 %v1374_v0 }
 0x623   :  { %1289 = vmatpush3.msra.mxu1 %v808_v58 }
 0x624   :  { %1302 = vmatprep.subr.mxu1 %v1374_v0 }
 0x6de   :  { %v692_v45 = vpop.f32.mrf.mxu1 }
 0x6df   :  { %v693_v46 = vadd.f32 %v1115_v44, %v692_v45 }
 0x6e0   :  { %v1274_v47 = vpop.f32.mrf.mxu1 }
 0x6e1   :  { %v696_v48 = vmax.f32 %v693_v46, 0.0 }
 0x6e3   :  { %1282 = vmatmul.mubr.msk.f32.vlgmr.msra.gmra.mxu0 %vm141_vm1, %v696_v48 }
 0x6e4   :  { %1299 = vmatprep.mubr.msk.f32.mxu0 %vm1375_vm0, %v1374_v0  ;;  %1294 = vmatpush3.msra.mxu0 %v893_v11 }
 0x6e5   :  { %1295 = vmatprep.subr.mxu0 %v1374_v0 }
 0x6e6   :  { %1296 = vmatpush3.msra.mxu0 %v892_v12 }
 0x6e7   :  { %1297 = vmatprep.subr.mxu0 %v1374_v0 }
 0x6e8   :  { %1298 = vmatpush3.msra.mxu0 %v891_v13 }
 0x7a3   :  { %v775_v50 = vpop.f32.mrf.mxu0 }
 0x7a4   :  { %v776_v51 = vadd.f32 %v1117_v49, %v775_v50 }
 0x7a5   :  { %v1283_v52 = vpop.f32.mrf.mxu0 }
 0x7a6   :  { %v779_v53 = vsel %vm141_vm1, %v776_v51, 0.0  ;;  %v782_v54 = vmul.f32 %v776_v51, %v776_v51 }
 0x7a7   :  { %780 = vadd.xlane.f32.xlu1 %v779_v53 }
 0x7a8   :  { %v783_v55 = vsel %vm141_vm1, %v782_v54, 0.0 }
 0x7ab   :  { %784 = vadd.xlane.f32.xlu1 %v783_v55 }
 0x830   :  { %v781_v59 = vpop.xlane.xlu1 %780 }
 0x831   :  { %v786_v60 = vmul.f32 0.041666668, %v781_v59 }
 0x833   :  { %v788_v62 = vmul.f32 %v786_v60, %v786_v60  ;;  %v790_v3 = vsub.f32 %v776_v51, %v786_v60 }
 0x834   :  { %v785_v61 = vpop.xlane.xlu1 %784 }
 0x835   :  { %v787_v63 = vmul.f32 0.041666668, %v785_v61 }
 0x837   :  { %v789_v1 = vsub.f32 %v787_v63, %v788_v62 }
 0x839   :  { %v791_v2 = vadd.f32 1e-05, %v789_v1 }
 0x83b   :  { %1323 = vrsqrt.f32 %v791_v2 }
 0x848   :  { %v1324_v4 = vpop.eup %1323 }
 0x849   :  { %v793_v6 = vmul.f32 %v1324_v4, %v790_v3 }
 0x84b   :  { %v799_v8 = vmul.f32 %v1119_v5, %v793_v6 }
 0x84d   :  { %v805_v9 = vadd.f32 %v1120_v7, %v799_v8 }
 0x84f   :  { %v806_v10 = vadd.f32 %v805_v9, %v613_v40 }
 0x851   :  { %1291 = vmatmul.mubr.msk.f32.vlgmr.msra.gmra.mxu1 %vm141_vm1, %v806_v10 }
 0x852   :  { %1308 = vmatprep.mubr.msk.f32.mxu1 %vm1375_vm0, %v1374_v0  ;;  %1303 = vmatpush3.msra.mxu1 %v1002_v26 }
 0x853   :  { %1304 = vmatprep.subr.mxu1 %v1374_v0 }
 0x854   :  { %1305 = vmatpush3.msra.mxu1 %v1001_v27 }
 0x855   :  { %1306 = vmatprep.subr.mxu1 %v1374_v0  ;;  %v1126_v0 = vld [vmem:[%s1637_s4 + $0x12] ss:$0 sm:$0xff] }
 0x856   :  { %1307 = vmatpush3.msra.mxu1 %v1000_v28 }
 0x911   :  { %v885_v15 = vpop.f32.mrf.mxu1 }
 0x912   :  { %v886_v16 = vadd.f32 %v1121_v14, %v885_v15 }
 0x913   :  { %v1292_v17 = vpop.f32.mrf.mxu1 }
 0x914   :  { %v889_v18 = vmax.f32 %v886_v16, 0.0 }
 0x916   :  { %1300 = vmatmul.mubr.msk.f32.vlgmr.msra.gmra.mxu0 %vm141_vm1, %v889_v18 }
 0x9d6   :  { %v968_v20 = vpop.f32.mrf.mxu0 }
 0x9d7   :  { %v969_v21 = vadd.f32 %v1123_v19, %v968_v20 }
 0x9d8   :  { %v1301_v22 = vpop.f32.mrf.mxu0 }
 0x9d9   :  { %v972_v23 = vsel %vm141_vm1, %v969_v21, 0.0  ;;  %v975_v24 = vmul.f32 %v969_v21, %v969_v21 }
 0x9da   :  { %973 = vadd.xlane.f32.xlu1 %v972_v23 }
 0x9db   :  { %v976_v25 = vsel %vm141_vm1, %v975_v24, 0.0 }
 0x9de   :  { %977 = vadd.xlane.f32.xlu1 %v976_v25 }
 0xa63   :  { %v974_v29 = vpop.xlane.xlu1 %973 }
 0xa64   :  { %v979_v30 = vmul.f32 0.041666668, %v974_v29 }
 0xa66   :  { %v981_v32 = vmul.f32 %v979_v30, %v979_v30  ;;  %v983_v36 = vsub.f32 %v969_v21, %v979_v30 }
 0xa67   :  { %v978_v31 = vpop.xlane.xlu1 %977 }
 0xa68   :  { %v980_v33 = vmul.f32 0.041666668, %v978_v31 }
 0xa6a   :  { %v982_v34 = vsub.f32 %v980_v33, %v981_v32 }
 0xa6c   :  { %v984_v35 = vadd.f32 1e-05, %v982_v34 }
 0xa6e   :  { %1325 = vrsqrt.f32 %v984_v35 }
 0xa7b   :  { %v1326_v37 = vpop.eup %1325 }
 0xa7c   :  { %v986_v39 = vmul.f32 %v1326_v37, %v983_v36 }
 0xa7e   :  { %v992_v40 = vmul.f32 %v1125_v38, %v986_v39 }
 0xa80   :  { %v998_v41 = vadd.f32 %v1126_v0, %v992_v40 }
 0xa82   :  { %v999_v42 = vadd.f32 %v998_v41, %v806_v10 }
 0xa84   :  { %1309 = vmatmul.mubr.msk.f32.vlgmr.msra.gmra.mxu1 %vm141_vm1, %v999_v42 }
 0xb44   :  { %v1079_v44 = vpop.f32.mrf.mxu1 }
 0xb45   :  { %v1080_v45 = vadd.f32 %v1127_v43, %v1079_v44 }
 0xb46   :  { %v1310_v46 = vpop.f32.mrf.mxu1 }
 0xb47   :  { %1083 = vst [vmem:[#allocation5] sm:$0xff] %v1080_v45 }
 0xb48   :  { %1358 = shalt.err (!%p1355_p9)
}
 0xb49   :  { %1093 = dma.vmem_to_hbm [thread:$0]  %s1091_s11, 128, %s1640_s7, [#allocation4]  }
 0xb4a   :  { %1369 = dma.done.wait [#allocation4], 128  }
 0xb4b   :  { %1370 = vsyncadd [#allocation4], 4294967168 }
 0xb4c   :  { %1097 = vsyncpa [#allocation3], 1 }
 0xb4d   :  { %1098 = vsyncpa [#allocation4], 1 }

</bundles_post_ra>
